<compile_context>
chip_gen: v5e
topology: v5e:2x2
jax: 0.10.0
libtpu: 0.0.40
codegen_flags: <defaults>
</compile_context>

<pallas_src>
import jax
import jax.numpy as jnp
import numpy as np
from jax.experimental import pallas as pl
from jax.experimental.pallas import tpu as pltpu


def _mix_partials_kernel(yhat_ref, y_ref, out_ref, acc_ref):
    """Accumulate per-D3 partial sums for one M-chunk.

    yhat_ref, y_ref : (tile_m, D3, tile_l) blocks in the input dtype.
    out_ref         : (1, 4, D3) f32 partial sums for this M-chunk:
                      [sum (yhat-y)^2, sum y^2, sum |yhat-y|, sum |y|].
    acc_ref         : (4, D3, tile_l) f32 lane-dense accumulator (VMEM scratch).
    """
    li = pl.program_id(1)

    @pl.when(li == 0)
    def _():
        acc_ref[...] = jnp.zeros_like(acc_ref)

    yh = yhat_ref[...].astype(jnp.float32)
    yy = y_ref[...].astype(jnp.float32)
    d = yh - yy

    # Reduce over the leading (tile_m) axis only: vreg-wise VPU adds and
    # full-lane accumulator stores (no XLU work, no masked sub-lane stores).
    acc_ref[0] += jnp.sum(d * d, axis=0)
    acc_ref[1] += jnp.sum(yy * yy, axis=0)
    acc_ref[2] += jnp.sum(jnp.abs(d), axis=0)
    acc_ref[3] += jnp.sum(jnp.abs(yy), axis=0)

    # Cross-lane reduction + narrow (4, D3) store only once per M-chunk.
    @pl.when(li == pl.num_programs(1) - 1)
    def _():
        out_ref[...] = jnp.sum(acc_ref[...], axis=2)[None, :, :]


def _choose_tiles(m, d3, l, itemsize, block_budget_bytes, acc_plane_budget_bytes):
    """Pick (tile_m, num_m, tile_l, num_l) so blocks are big but VMEM-safe."""
    # Lane (last-axis) tile: keep full L when it is not 128-tileable (a block dim
    # equal to the full array dim is always legal); otherwise halve while the
    # block row or the f32 accumulator plane would exceed its budget.
    tile_l = l
    if l % 128 == 0:
        while (tile_l % 256 == 0
               and (d3 * tile_l * itemsize > block_budget_bytes
                    or d3 * tile_l * 4 > acc_plane_budget_bytes)):
            tile_l //= 2
    num_l = l // tile_l

    # Leading-axis tile: biggest divisor of M whose block stays within budget.
    per_row_bytes = d3 * tile_l * itemsize
    max_tm = max(1, block_budget_bytes // per_row_bytes)
    tile_m = 1
    for cand in range(min(m, max_tm), 0, -1):
        if m % cand == 0:
            tile_m = cand
            break
    num_m = m // tile_m
    return tile_m, num_m, tile_l, num_l


def mix_l1_l2_loss(yhat, y, *, scalar=0.5, eps=1e-06,
                   block_budget_bytes=1 << 20,        # ~1 MiB per input block
                   acc_plane_budget_bytes=256 << 10): # ≤256 KiB per f32 acc plane
    # eps kept for API parity with the PyTorch module; it is unused in forward
    # (division by zero behaves like the reference module).
    del eps
    assert yhat.shape == y.shape and yhat.ndim == 6
    d0, d1, d2, d3, d4, d5 = yhat.shape
    m = d0 * d1 * d2
    l = d4 * d5

    # Free (contiguous) reshape: dims 0..2 collapse to M, dims 4..5 collapse to L.
    # No transpose, no dtype cast -> no extra HBM passes before the kernel.
    yhat3d = yhat.reshape(m, d3, l)
    y3d = y.reshape(m, d3, l)

    itemsize = jnp.dtype(yhat.dtype).itemsize
    tile_m, num_m, tile_l, num_l = _choose_tiles(
        m, d3, l, itemsize, block_budget_bytes, acc_plane_budget_bytes)

    partials = pl.pallas_call(
        _mix_partials_kernel,
        out_shape=jax.ShapeDtypeStruct((num_m, 4, d3), jnp.float32),
        grid_spec=pltpu.PrefetchScalarGridSpec(
            num_scalar_prefetch=0,
            grid=(num_m, num_l),
            in_specs=[
                pl.BlockSpec((tile_m, d3, tile_l), lambda mi, li: (mi, 0, li)),
                pl.BlockSpec((tile_m, d3, tile_l), lambda mi, li: (mi, 0, li)),
            ],
            out_specs=pl.BlockSpec((1, 4, d3), lambda mi, li: (mi, 0, 0)),
            scratch_shapes=[pltpu.VMEM((4, d3, tile_l), jnp.float32)],
        ),
        compiler_params=pltpu.CompilerParams(
            # M-chunks are independent -> "parallel" lets v7x shard them across
            # both TensorCores; the lane-chunk axis carries the accumulator.
            dimension_semantics=("parallel", "arbitrary"),
            vmem_limit_bytes=32 * 1024 * 1024,
        ),
    )(yhat3d, y3d)

    # Tiny epilogue: combine per-chunk partials and apply sqrt / divide / sum.
    sums = jnp.sum(partials, axis=0)               # (4, D3)
    ssd, ssy, sad, say = sums[0], sums[1], sums[2], sums[3]
    l2_term = jnp.sum(jnp.sqrt(ssd) / jnp.sqrt(ssy))
    l1_term = jnp.sum(sad / say)
    return scalar * l2_term + scalar * l1_term


def _reference(yhat, y, scalar=0.5):
    yhat = yhat.astype(jnp.float32)
    y = y.astype(jnp.float32)
    d = yhat - y
    axes = (0, 1, 2, 4, 5)
    l2 = jnp.sum(jnp.sqrt(jnp.sum(d * d, axis=axes))
                 / jnp.sqrt(jnp.sum(y * y, axis=axes)))
    l1 = jnp.sum(jnp.sum(jnp.abs(d), axis=axes) / jnp.sum(jnp.abs(y), axis=axes))
    return scalar * l2 + scalar * l1


if __name__ == "__main__":
    key = jax.random.PRNGKey(0)
    k1, k2 = jax.random.split(key)
    # Small 6-D shape consistent with the forward: (D0,D1,D2,D3,D4,D5)
    # -> M = 16, D3 = 8, L = 128.
    shape = (2, 2, 4, 8, 8, 16)
    yhat = jax.random.normal(k1, shape, dtype=jnp.float32)
    y = jax.random.normal(k2, shape, dtype=jnp.float32)

    ref = jax.block_until_ready(_reference(yhat, y))

    # 1) Default tiling (single big block).
    loss = jax.block_until_ready(mix_l1_l2_loss(yhat, y))
    np.testing.assert_allclose(np.asarray(loss), np.asarray(ref), rtol=1e-5, atol=1e-5)

    # 2) Forced tiny block budget -> exercises the multi-chunk grid, the
    #    "parallel" M axis and the partial-sum combine.
    loss_tiled = jax.block_until_ready(
        mix_l1_l2_loss(yhat, y,
                       block_budget_bytes=8 * 1024,
                       acc_plane_budget_bytes=4 * 1024))
    np.testing.assert_allclose(np.asarray(loss_tiled), np.asarray(ref),
                               rtol=1e-5, atol=1e-5)

    # 3) bf16 inputs: no wrapper up-cast; the kernel casts tiles to f32.
    yhat_bf = yhat.astype(jnp.bfloat16)
    y_bf = y.astype(jnp.bfloat16)
    loss_bf = jax.block_until_ready(mix_l1_l2_loss(yhat_bf, y_bf))
    ref_bf = jax.block_until_ready(_reference(yhat_bf, y_bf))
    np.testing.assert_allclose(np.asarray(loss_bf), np.asarray(ref_bf),
                               rtol=1e-3, atol=1e-3)

    print("KERNEL_OK")
</pallas_src>

<mosaic_0001>
module attributes {stable_mosaic.version = 11 : i64} {
  func.func @_mix_partials_kernel(%arg0: i32, %arg1: i32, %arg2: memref<16x8x128xf32, #tpu.memory_space<vmem>>, %arg3: memref<16x8x128xf32, #tpu.memory_space<vmem>>, %arg4: memref<1x4x8xf32, #tpu.memory_space<vmem>>, %arg5: memref<4x8x128xf32, #tpu.memory_space<vmem>>) attributes {dimension_semantics = [#tpu.dimension_semantics<parallel>, #tpu.dimension_semantics<arbitrary>], iteration_bounds = array<i64: 1, 1>, scalar_prefetch = 0 : i64, scratch_operands = 1 : i64, tpu.core_type = #tpu.core_type<tc>, window_params = [{transform_indices = @transform_0, window_bounds = array<i64: 16, 8, 128>}, {transform_indices = @transform_1, window_bounds = array<i64: 16, 8, 128>}, {transform_indices = @transform_2, window_bounds = array<i64: 1, 4, 8>}]} {
    %c0_i32 = arith.constant 0 : i32
    %0 = arith.cmpi eq, %arg1, %c0_i32 : i32
    %1 = arith.extui %0 : i1 to i32
    %c0_i32_0 = arith.constant 0 : i32
    %2 = arith.cmpi ne, %1, %c0_i32_0 : i32
    scf.if %2 {
      %cst_32 = arith.constant 0.000000e+00 : f32
      %41 = vector.broadcast %cst_32 : f32 to vector<4x8x128xf32>
      %c0_33 = arith.constant 0 : index
      %c0_34 = arith.constant 0 : index
      %c0_35 = arith.constant 0 : index
      %42 = vector.load %arg5[%c0_33, %c0_34, %c0_35] : memref<4x8x128xf32, #tpu.memory_space<vmem>>, vector<4x8x128xf32>
      tpu.vector_store %arg5[%c0_33, %c0_34, %c0_35], %41 {strides = array<i32>} : memref<4x8x128xf32, #tpu.memory_space<vmem>>, vector<4x8x128xf32>,
    } else {
    }
    %c0 = arith.constant 0 : index
    %c0_1 = arith.constant 0 : index
    %c0_2 = arith.constant 0 : index
    %3 = vector.load %arg2[%c0, %c0_1, %c0_2] : memref<16x8x128xf32, #tpu.memory_space<vmem>>, vector<16x8x128xf32>
    %c0_3 = arith.constant 0 : index
    %c0_4 = arith.constant 0 : index
    %c0_5 = arith.constant 0 : index
    %4 = vector.load %arg3[%c0_3, %c0_4, %c0_5] : memref<16x8x128xf32, #tpu.memory_space<vmem>>, vector<16x8x128xf32>
    %5 = arith.subf %3, %4 : vector<16x8x128xf32>
    %c0_6 = arith.constant 0 : index
    %c0_7 = arith.constant 0 : index
    %c0_8 = arith.constant 0 : index
    %6 = vector.load %arg5[%c0_6, %c0_7, %c0_8] : memref<4x8x128xf32, #tpu.memory_space<vmem>>, vector<1x8x128xf32>
    %7 = vector.shape_cast %6 : vector<1x8x128xf32> to vector<8x128xf32>
    %8 = arith.mulf %5, %5 : vector<16x8x128xf32>
    %cst = arith.constant dense<0.000000e+00> : vector<8x128xf32>
    %9 = vector.multi_reduction <add>, %8, %cst [0] : vector<16x8x128xf32> to vector<8x128xf32>
    %10 = arith.addf %7, %9 : vector<8x128xf32>
    %c0_9 = arith.constant 0 : index
    %c0_10 = arith.constant 0 : index
    %c0_11 = arith.constant 0 : index
    %11 = vector.load %arg5[%c0_9, %c0_10, %c0_11] : memref<4x8x128xf32, #tpu.memory_space<vmem>>, vector<1x8x128xf32>
    %12 = vector.shape_cast %11 : vector<1x8x128xf32> to vector<8x128xf32>
    %13 = vector.shape_cast %10 : vector<8x128xf32> to vector<1x8x128xf32>
    tpu.vector_store %arg5[%c0_9, %c0_10, %c0_11], %13 {strides = array<i32>} : memref<4x8x128xf32, #tpu.memory_space<vmem>>, vector<1x8x128xf32>,
    %c1 = arith.constant 1 : index
    %c0_12 = arith.constant 0 : index
    %c0_13 = arith.constant 0 : index
    %14 = vector.load %arg5[%c1, %c0_12, %c0_13] : memref<4x8x128xf32, #tpu.memory_space<vmem>>, vector<1x8x128xf32>
    %15 = vector.shape_cast %14 : vector<1x8x128xf32> to vector<8x128xf32>
    %16 = arith.mulf %4, %4 : vector<16x8x128xf32>
    %cst_14 = arith.constant dense<0.000000e+00> : vector<8x128xf32>
    %17 = vector.multi_reduction <add>, %16, %cst_14 [0] : vector<16x8x128xf32> to vector<8x128xf32>
    %18 = arith.addf %15, %17 : vector<8x128xf32>
    %c1_15 = arith.constant 1 : index
    %c0_16 = arith.constant 0 : index
    %c0_17 = arith.constant 0 : index
    %19 = vector.load %arg5[%c1_15, %c0_16, %c0_17] : memref<4x8x128xf32, #tpu.memory_space<vmem>>, vector<1x8x128xf32>
    %20 = vector.shape_cast %19 : vector<1x8x128xf32> to vector<8x128xf32>
    %21 = vector.shape_cast %18 : vector<8x128xf32> to vector<1x8x128xf32>
    tpu.vector_store %arg5[%c1_15, %c0_16, %c0_17], %21 {strides = array<i32>} : memref<4x8x128xf32, #tpu.memory_space<vmem>>, vector<1x8x128xf32>,
    %c2 = arith.constant 2 : index
    %c0_18 = arith.constant 0 : index
    %c0_19 = arith.constant 0 : index
    %22 = vector.load %arg5[%c2, %c0_18, %c0_19] : memref<4x8x128xf32, #tpu.memory_space<vmem>>, vector<1x8x128xf32>
    %23 = vector.shape_cast %22 : vector<1x8x128xf32> to vector<8x128xf32>
    %24 = math.absf %5 : vector<16x8x128xf32>
    %cst_20 = arith.constant dense<0.000000e+00> : vector<8x128xf32>
    %25 = vector.multi_reduction <add>, %24, %cst_20 [0] : vector<16x8x128xf32> to vector<8x128xf32>
    %26 = arith.addf %23, %25 : vector<8x128xf32>
    %c2_21 = arith.constant 2 : index
    %c0_22 = arith.constant 0 : index
    %c0_23 = arith.constant 0 : index
    %27 = vector.load %arg5[%c2_21, %c0_22, %c0_23] : memref<4x8x128xf32, #tpu.memory_space<vmem>>, vector<1x8x128xf32>
    %28 = vector.shape_cast %27 : vector<1x8x128xf32> to vector<8x128xf32>
    %29 = vector.shape_cast %26 : vector<8x128xf32> to vector<1x8x128xf32>
    tpu.vector_store %arg5[%c2_21, %c0_22, %c0_23], %29 {strides = array<i32>} : memref<4x8x128xf32, #tpu.memory_space<vmem>>, vector<1x8x128xf32>,
    %c3 = arith.constant 3 : index
    %c0_24 = arith.constant 0 : index
    %c0_25 = arith.constant 0 : index
    %30 = vector.load %arg5[%c3, %c0_24, %c0_25] : memref<4x8x128xf32, #tpu.memory_space<vmem>>, vector<1x8x128xf32>
    %31 = vector.shape_cast %30 : vector<1x8x128xf32> to vector<8x128xf32>
    %32 = math.absf %4 : vector<16x8x128xf32>
    %cst_26 = arith.constant dense<0.000000e+00> : vector<8x128xf32>
    %33 = vector.multi_reduction <add>, %32, %cst_26 [0] : vector<16x8x128xf32> to vector<8x128xf32>
    %34 = arith.addf %31, %33 : vector<8x128xf32>
    %c3_27 = arith.constant 3 : index
    %c0_28 = arith.constant 0 : index
    %c0_29 = arith.constant 0 : index
    %35 = vector.load %arg5[%c3_27, %c0_28, %c0_29] : memref<4x8x128xf32, #tpu.memory_space<vmem>>, vector<1x8x128xf32>
    %36 = vector.shape_cast %35 : vector<1x8x128xf32> to vector<8x128xf32>
    %37 = vector.shape_cast %34 : vector<8x128xf32> to vector<1x8x128xf32>
    tpu.vector_store %arg5[%c3_27, %c0_28, %c0_29], %37 {strides = array<i32>} : memref<4x8x128xf32, #tpu.memory_space<vmem>>, vector<1x8x128xf32>,
    %c0_i32_30 = arith.constant 0 : i32
    %38 = arith.cmpi eq, %arg1, %c0_i32_30 : i32
    %39 = arith.extui %38 : i1 to i32
    %c0_i32_31 = arith.constant 0 : i32
    %40 = arith.cmpi ne, %39, %c0_i32_31 : i32
    scf.if %40 {
      %c0_32 = arith.constant 0 : index
      %c0_33 = arith.constant 0 : index
      %c0_34 = arith.constant 0 : index
      %41 = vector.load %arg5[%c0_32, %c0_33, %c0_34] : memref<4x8x128xf32, #tpu.memory_space<vmem>>, vector<4x8x128xf32>
      %cst_35 = arith.constant dense<0.000000e+00> : vector<4x8xf32>
      %42 = vector.multi_reduction <add>, %41, %cst_35 [2] : vector<4x8x128xf32> to vector<4x8xf32>
      %43 = vector.shape_cast %42 : vector<4x8xf32> to vector<1x4x8xf32>
      %c0_36 = arith.constant 0 : index
      %c0_37 = arith.constant 0 : index
      %c0_38 = arith.constant 0 : index
      %44 = vector.load %arg4[%c0_36, %c0_37, %c0_38] : memref<1x4x8xf32, #tpu.memory_space<vmem>>, vector<1x4x8xf32>
      tpu.vector_store %arg4[%c0_36, %c0_37, %c0_38], %43 {strides = array<i32>} : memref<1x4x8xf32, #tpu.memory_space<vmem>>, vector<1x4x8xf32>,
    } else {
    }
    return
  }
  func.func @transform_0(%arg0: i32, %arg1: i32) -> (i32, i32, i32) {
    %c0_i32 = arith.constant 0 : i32
    %c0_i32_0 = arith.constant 0 : i32
    return %arg0, %c0_i32, %arg1 : i32, i32, i32
  }
  func.func @transform_1(%arg0: i32, %arg1: i32) -> (i32, i32, i32) {
    %c0_i32 = arith.constant 0 : i32
    %c0_i32_0 = arith.constant 0 : i32
    return %arg0, %c0_i32, %arg1 : i32, i32, i32
  }
  func.func @transform_2(%arg0: i32, %arg1: i32) -> (i32, i32, i32) {
    %c0_i32 = arith.constant 0 : i32
    %c0_i32_0 = arith.constant 0 : i32
    %c0_i32_1 = arith.constant 0 : i32
    return %arg0, %c0_i32, %c0_i32_0 : i32, i32, i32
  }
}

</mosaic_0001>

<bundles_post_ra>
// kernel: tpu_custom_call.1
= control target key start
LH: loop header
LB: loop body
LE: loop exit
PB: predicated region body
PF: predicated region fallthrough
CT: control target
= control target key end

     0   :  { %7 = vsyncpa [#allocation4], 0  ;;  %s514_s0 = inlined_call_operand.hbm [shape: f32[16,8,128], index: 0, kind: input, shape index: {}]   ;;  %s515_s1 = inlined_call_operand.hbm [shape: f32[16,8,128], index: 1, kind: input, shape index: {}]   ;;  %s516_s2 = inlined_call_operand.hbm [shape: f32[1,4,8], index: 2, kind: output, shape index: {}]  }
   0x1   :  { %8 = vsyncpa [#allocation7], 0 }
   0x2   :  { %9 = vsyncpa [#allocation5], 0  ;;  %s14_s11 = sshll.u32 %s514_s0, 4  ;;  %s374_s12 = smov [#allocation3]   ;;  %s15_s11 = int_to_ptr.hbm [resolvable:$true] %s14_s11 }
   0x3   :  { %s16_s13 = sshll.u32 %s374_s12, 4  ;;  %s27_s16 = sshll.u32 %s515_s1, 4  ;;  %s17_s13 = int_to_ptr.vmem [resolvable:$true] %s16_s13  ;;  %s28_s16 = int_to_ptr.hbm [resolvable:$true] %s27_s16 }
   0x4   :  { %s375_s17 = smov 128   ;;  %s376_s18 = smov 8  }
   0x5   :  { %22 = dma.hbm_to_vmem [thread:$0]  %s15_s11, 2048, %s17_s13, [#allocation4], %s375_s17, %s375_s17, %s376_s18  }
   0x6   :  { %s377_s19 = smov [#allocation6]  }
   0x7   :  { %s29_s20 = sshll.u32 %s377_s19, 4  ;;  %s30_s20 = int_to_ptr.vmem [resolvable:$true] %s29_s20 }
   0x8   :  { %35 = dma.hbm_to_vmem [thread:$0]  %s28_s16, 2048, %s30_s20, [#allocation7], %s375_s17, %s375_s17, %s376_s18  }
   0x9   :  { %368 = dma.done.wait [#allocation4], 2048  }
   0xa   :  { %369 = vsyncadd [#allocation4], 4294965248 }
   0xb   :  { %370 = dma.done.wait [#allocation7], 2048  }
   0xc   :  { %371 = vsyncadd [#allocation7], 4294965248  ;;  %v52_v0 = vld [vmem:[#allocation3] sm:$0xff]  ;;  %v53_v1 = vld [vmem:[#allocation3 + $0x8] sm:$0xff]  ;;  %vm264_vm0 = vcmask 1041409   ;;  %vm266_vm1 = vcmask 1042434  }
   0xd   :  { %v54_v2 = vld [vmem:[#allocation3 + $0x10] sm:$0xff]  ;;  %v400_v3 = vld [vmem:[#allocation6] sm:$0xff]  ;;  %v402_v4 = vld [vmem:[#allocation6 + $0x8] sm:$0xff]  ;;  %s378_s0 = smov [#allocation8]   ;;  %s280_s23 = sshll.u32 %s516_s2, 4  ;;  %vm268_vm2 = vcmask 1043459   ;;  %s281_s23 = int_to_ptr.hbm [resolvable:$true] %s280_s23 }
   0xe   :  { %v404_v5 = vld [vmem:[#allocation6 + $0x10] sm:$0xff]  ;;  %v84_v6 = vsub.f32 %v52_v0, %v400_v3  ;;  %v85_v7 = vsub.f32 %v53_v1, %v402_v4  ;;  %v55_v8 = vld [vmem:[#allocation3 + $0x18] sm:$0xff]  ;;  %v56_v11 = vld [vmem:[#allocation3 + $0x20] sm:$0xff]  ;;  %v136_v47 = vmul.f32 %v400_v3, %v400_v3  ;;  %v137_v54 = vmul.f32 %v402_v4, %v402_v4  ;;  %s278_s1 = sshll.u32 %s378_s0, 4  ;;  %s279_s1 = int_to_ptr.vmem [resolvable:$true] %s278_s1 }
   0xf   :  { %v408_v9 = vld [vmem:[#allocation6 + $0x18] sm:$0xff]  ;;  %v86_v10 = vsub.f32 %v54_v2, %v404_v5  ;;  %v411_v12 = vld [vmem:[#allocation6 + $0x20] sm:$0xff]  ;;  %v57_v16 = vld [vmem:[#allocation3 + $0x28] sm:$0xff]  ;;  %v138_v58 = vmul.f32 %v404_v5, %v404_v5  ;;  %vm271_vm3 = vcmask 60416  }
  0x10   :  { %v87_v13 = vsub.f32 %v55_v8, %v408_v9  ;;  %v101_v14 = vmul.f32 %v84_v6, %v84_v6  ;;  %v102_v15 = vmul.f32 %v85_v7, %v85_v7  ;;  %v414_v17 = vld [vmem:[#allocation6 + $0x28] sm:$0xff]  ;;  %v88_v18 = vsub.f32 %v56_v11, %v411_v12  ;;  %v58_v20 = vld [vmem:[#allocation3 + $0x30] sm:$0xff]  ;;  %v59_v22 = vld [vmem:[#allocation3 + $0x38] sm:$0xff] }
  0x11   :  { %v103_v19 = vmul.f32 %v86_v10, %v86_v10  ;;  %v417_v21 = vld [vmem:[#allocation6 + $0x30] sm:$0xff]  ;;  %v419_v23 = vld [vmem:[#allocation6 + $0x38] sm:$0xff]  ;;  %v89_v24 = vsub.f32 %v57_v16, %v414_v17  ;;  %v171_v27 = vand.u32 2147483647, %v84_v6  ;;  %v172_v28 = vand.u32 2147483647, %v85_v7 }
  0x12   :  { %v104_v25 = vmul.f32 %v87_v13, %v87_v13  ;;  %v117_v26 = vadd.f32 %v102_v15, %v101_v14  ;;  %v173_v29 = vand.u32 2147483647, %v86_v10  ;;  %v90_v30 = vsub.f32 %v58_v20, %v417_v21  ;;  %v60_v33 = vld [vmem:[#allocation3 + $0x40] sm:$0xff]  ;;  %v61_v37 = vld [vmem:[#allocation3 + $0x48] sm:$0xff]  ;;  %v62_v38 = vld [vmem:[#allocation3 + $0x50] sm:$0xff] }
  0x13   :  { %v105_v31 = vmul.f32 %v88_v18, %v88_v18  ;;  %v423_v34 = vld [vmem:[#allocation6 + $0x40] sm:$0xff]  ;;  %v174_v35 = vand.u32 2147483647, %v87_v13  ;;  %v187_v36 = vadd.f32 %v172_v28, %v171_v27  ;;  %v91_v39 = vsub.f32 %v59_v22, %v419_v23  ;;  %v63_v42 = vld [vmem:[#allocation3 + $0x58] sm:$0xff]  ;;  %v426_v43 = vld [vmem:[#allocation6 + $0x48] sm:$0xff] }
  0x14   :  { %v118_v32 = vadd.f32 %v117_v26, %v103_v19  ;;  %v106_v40 = vmul.f32 %v89_v24, %v89_v24  ;;  %v428_v44 = vld [vmem:[#allocation6 + $0x50] sm:$0xff]  ;;  %v175_v45 = vand.u32 2147483647, %v88_v18  ;;  %v64_v48 = vld [vmem:[#allocation3 + $0x60] sm:$0xff]  ;;  %v432_v49 = vld [vmem:[#allocation6 + $0x58] sm:$0xff]  ;;  %v92_v51 = vsub.f32 %v60_v33, %v423_v34 }
  0x15   :  { %v188_v46 = vadd.f32 %v187_v36, %v173_v29  ;;  %v434_v50 = vld [vmem:[#allocation6 + $0x60] sm:$0xff]  ;;  %v107_v52 = vmul.f32 %v90_v30, %v90_v30  ;;  %v65_v55 = vld [vmem:[#allocation3 + $0x68] sm:$0xff]  ;;  %v176_v56 = vand.u32 2147483647, %v89_v24  ;;  %v66_v59 = vld [vmem:[#allocation3 + $0x70] sm:$0xff]  ;;  %v93_v62 = vsub.f32 %v61_v37, %v426_v43 }
  0x16   :  { %v119_v41 = vadd.f32 %v118_v32, %v104_v25  ;;  %v441_v60 = vld [vmem:[#allocation6 + $0x68] sm:$0xff]  ;;  %v443_v61 = vld [vmem:[#allocation6 + $0x70] sm:$0xff]  ;;  %v94_v63 = vsub.f32 %v62_v38, %v428_v44  ;;  %v108_v0 = vmul.f32 %v91_v39, %v91_v39  ;;  %v95_v2 = vsub.f32 %v63_v42, %v432_v49  ;;  %v67_v20 = vld [vmem:[#allocation3 + $0x78] sm:$0xff] }
  0x17   :  { %v189_v57 = vadd.f32 %v188_v46, %v174_v35  ;;  %v449_v6 = vsub.f32 %v64_v48, %v434_v50  ;;  %v177_v7 = vand.u32 2147483647, %v90_v30  ;;  %v109_v10 = vmul.f32 %v92_v51, %v92_v51  ;;  %v459_v22 = vld [vmem:[#allocation6 + $0x78] sm:$0xff] }
  0x18   :  { %v120_v53 = vadd.f32 %v119_v41, %v105_v31  ;;  %v139_v13 = vmul.f32 %v408_v9, %v408_v9  ;;  %v152_v14 = vadd.f32 %v137_v54, %v136_v47  ;;  %v454_v15 = vsub.f32 %v65_v55, %v441_v60 }
  0x19   :  { %v190_v8 = vadd.f32 %v189_v57, %v175_v45  ;;  %v457_v16 = vsub.f32 %v66_v59, %v443_v61  ;;  %v178_v18 = vand.u32 2147483647, %v91_v39  ;;  %v110_v24 = vmul.f32 %v93_v62, %v93_v62 }
  0x1a   :  { %v121_v1 = vadd.f32 %v120_v53, %v106_v40  ;;  %v140_v26 = vmul.f32 %v411_v12, %v411_v12  ;;  %v153_v27 = vadd.f32 %v152_v14, %v138_v58  ;;  %v179_v28 = vand.u32 2147483647, %v92_v51 }
  0x1b   :  { %v191_v19 = vadd.f32 %v190_v8, %v176_v56  ;;  %v206_v30 = vand.u32 2147483647, %v400_v3  ;;  %v207_v31 = vand.u32 2147483647, %v402_v4  ;;  %v111_v32 = vmul.f32 %v94_v63, %v94_v63 }
  0x1c   :  { %v122_v11 = vadd.f32 %v121_v1, %v107_v52  ;;  %v141_v35 = vmul.f32 %v414_v17, %v414_v17  ;;  %v154_v36 = vadd.f32 %v153_v27, %v139_v13  ;;  %v99_v37 = vsub.f32 %v67_v20, %v459_v22 }
  0x1d   :  { %v192_v29 = vadd.f32 %v191_v19, %v177_v7  ;;  %v180_v38 = vand.u32 2147483647, %v93_v62  ;;  %v208_v40 = vand.u32 2147483647, %v404_v5  ;;  %v112_v41 = vmul.f32 %v95_v2, %v95_v2 }
  0x1e   :  { %v123_v25 = vadd.f32 %v122_v11, %v108_v0  ;;  %v142_v45 = vmul.f32 %v417_v21, %v417_v21  ;;  %v155_v3 = vadd.f32 %v154_v36, %v140_v26  ;;  %v181_v46 = vand.u32 2147483647, %v94_v63 }
  0x1f   :  { %v193_v39 = vadd.f32 %v192_v29, %v178_v18  ;;  %v209_v47 = vand.u32 2147483647, %v408_v9  ;;  %v222_v48 = vadd.f32 %v207_v31, %v206_v30  ;;  %v113_v51 = vmul.f32 %v449_v6, %v449_v6 }
  0x20   :  { %v124_v33 = vadd.f32 %v123_v25, %v109_v10  ;;  %v143_v53 = vmul.f32 %v419_v23, %v419_v23  ;;  %v156_v54 = vadd.f32 %v155_v3, %v141_v35  ;;  %v182_v5 = vand.u32 2147483647, %v95_v2 }
  0x21   :  { %v194_v4 = vadd.f32 %v193_v39, %v179_v28  ;;  %v210_v56 = vand.u32 2147483647, %v411_v12  ;;  %v223_v57 = vadd.f32 %v222_v48, %v208_v40  ;;  %v114_v58 = vmul.f32 %v454_v15, %v454_v15 }
  0x22   :  { %v125_v42 = vadd.f32 %v124_v33, %v110_v24  ;;  %v144_v9 = vmul.f32 %v423_v34, %v423_v34  ;;  %v157_v62 = vadd.f32 %v156_v54, %v142_v45  ;;  %v183_v63 = vand.u32 2147483647, %v449_v6 }
  0x23   :  { %v195_v55 = vadd.f32 %v194_v4, %v180_v38  ;;  %v211_v1 = vand.u32 2147483647, %v414_v17  ;;  %v224_v7 = vadd.f32 %v223_v57, %v209_v47  ;;  %v115_v2 = vmul.f32 %v457_v16, %v457_v16 }
  0x24   :  { %v126_v52 = vadd.f32 %v125_v42, %v111_v32  ;;  %v145_v12 = vmul.f32 %v426_v43, %v426_v43  ;;  %v158_v10 = vadd.f32 %v157_v62, %v143_v53  ;;  %v184_v11 = vand.u32 2147483647, %v454_v15 }
  0x25   :  { %v196_v0 = vadd.f32 %v195_v55, %v181_v46  ;;  %v212_v14 = vand.u32 2147483647, %v417_v21  ;;  %v225_v18 = vadd.f32 %v224_v7, %v210_v56  ;;  %v116_v19 = vmul.f32 %v99_v37, %v99_v37 }
  0x26   :  { %v127_v59 = vadd.f32 %v126_v52, %v112_v41  ;;  %v146_v17 = vmul.f32 %v428_v44, %v428_v44  ;;  %v159_v20 = vadd.f32 %v158_v10, %v144_v9  ;;  %v185_v24 = vand.u32 2147483647, %v457_v16 }
  0x27   :  { %v197_v13 = vadd.f32 %v196_v0, %v182_v5  ;;  %v213_v26 = vand.u32 2147483647, %v419_v23  ;;  %v226_v27 = vadd.f32 %v225_v18, %v211_v1  ;;  %v147_v15 = vmul.f32 %v432_v49, %v432_v49 }
  0x28   :  { %v128_v8 = vadd.f32 %v127_v59, %v113_v51  ;;  %v160_v29 = vadd.f32 %v159_v20, %v145_v12  ;;  %v186_v30 = vand.u32 2147483647, %v99_v37  ;;  %v214_v31 = vand.u32 2147483647, %v423_v34 }
  0x29   :  { %v198_v25 = vadd.f32 %v197_v13, %v183_v63  ;;  %v227_v32 = vadd.f32 %v226_v27, %v212_v14  ;;  %v148_v35 = vmul.f32 %v434_v50, %v434_v50  ;;  %v215_v38 = vand.u32 2147483647, %v426_v43 }
  0x2a   :  { %v129_v6 = vadd.f32 %v128_v8, %v114_v58  ;;  %v161_v36 = vadd.f32 %v160_v29, %v146_v17  ;;  %v149_v39 = vmul.f32 %v441_v60, %v441_v60  ;;  %v216_v37 = vand.u32 2147483647, %v428_v44 }
  0x2b   :  { %v199_v21 = vadd.f32 %v198_v25, %v184_v11  ;;  %v228_v23 = vadd.f32 %v227_v32, %v213_v26  ;;  %v150_v34 = vmul.f32 %v443_v61, %v443_v61  ;;  %v217_v3 = vand.u32 2147483647, %v432_v49 }
  0x2c   :  { %v130_v28 = vadd.f32 %v129_v6, %v115_v2  ;;  %v162_v40 = vadd.f32 %v161_v36, %v147_v15  ;;  %v151_v43 = vmul.f32 %v459_v22, %v459_v22  ;;  %v218_v47 = vand.u32 2147483647, %v434_v50 }
  0x2d   :  { %v200_v16 = vadd.f32 %v199_v21, %v185_v24  ;;  %v229_v42 = vadd.f32 %v228_v23, %v214_v31  ;;  %v219_v52 = vand.u32 2147483647, %v441_v60  ;;  %v220_v54 = vand.u32 2147483647, %v443_v61 }
  0x2e   :  { %v131_v33 = vadd.f32 %v130_v28, %v116_v19  ;;  %v163_v45 = vadd.f32 %v162_v40, %v148_v35  ;;  %v221_v55 = vand.u32 2147483647, %v459_v22  ;;  %v258_v59 = vlaneseq }
  0x2f   :  { %v201_v41 = vadd.f32 %v200_v16, %v186_v30  ;;  %v230_v46 = vadd.f32 %v229_v42, %v215_v38 }
  0x30   :  { %246 = vadd.xlane.f32.xlu0 %v131_v33  ;;  %v164_v4 = vadd.f32 %v163_v45, %v149_v39  ;;  %v259_v50 = vand.u32 127, %v258_v59 }
  0x31   :  { %250 = vadd.xlane.f32.xlu1 %v201_v41  ;;  %v231_v48 = vadd.f32 %v230_v46, %v216_v37 }
  0x32   :  { %v165_v51 = vadd.f32 %v164_v4, %v150_v34 }
  0x33   :  { %v232_v44 = vadd.f32 %v231_v48, %v217_v3 }
  0x34   :  { %v166_v53 = vadd.f32 %v165_v51, %v151_v43 }
  0x35   :  { %v233_v5 = vadd.f32 %v232_v44, %v218_v47 }
  0x37   :  { %v234_v49 = vadd.f32 %v233_v5, %v219_v52 }
  0x38   :  { %248 = vadd.xlane.f32.xlu0 %v166_v53 }
  0x39   :  { %v235_v56 = vadd.f32 %v234_v49, %v220_v54 }
  0x3b   :  { %v236_v57 = vadd.f32 %v235_v56, %v221_v55 }
  0x3d   :  { %252 = vadd.xlane.f32.xlu1 %v236_v57 }
  0xa3   :  { %v247_v58 = vpop.xlane.xlu0 %246 }
  0xa4   :  { %v251_v9 = vpop.xlane.xlu1 %250  ;;  %v260_v60 = vperm.slane %v247_v58, %v259_v50 }
  0xa5   :  { %v262_v1 = vperm.slane %v251_v9, %v259_v50 }
  0xab   :  { %v249_v62 = vpop.xlane.xlu0 %248 }
  0xac   :  { %v261_v63 = vperm.slane %v249_v62, %v259_v50 }
  0xae   :  { %v265_v0 = vsel %vm264_vm0, %v261_v63, %v260_v60 }
  0xaf   :  { %v267_v22 = vsel %vm266_vm1, %v262_v1, %v265_v0 }
  0xb0   :  { %v253_v61 = vpop.xlane.xlu1 %252 }
  0xb1   :  { %v263_v7 = vperm.slane %v253_v61, %v259_v50 }
  0xb3   :  { %v269_v2 = vsel %vm268_vm2, %v263_v7, %v267_v22 }
  0xb4   :  { %272 = vst.msk [vmem:[#allocation8] sm:$0xf] %vm271_vm3, %v269_v2 }
  0xb5   :  { %283 = dma.vmem_to_hbm [thread:$0]  %s279_s1, 64, %s281_s23, [#allocation5]  }
  0xb6   :  { %372 = dma.done.wait [#allocation5], 64  }
  0xb7   :  { %373 = vsyncadd [#allocation5], 4294967232 }
  0xb8   :  { %288 = vsyncpa [#allocation4], 1 }
  0xb9   :  { %289 = vsyncpa [#allocation7], 1 }
  0xba   :  { %290 = vsyncpa [#allocation5], 1 }

</bundles_post_ra>
